<compile_context>
chip_gen: v7x
topology: tpu7x:2x2x1
jax: 0.10.0
libtpu: 0.0.40
codegen_flags: <defaults>
</compile_context>

<pallas_src>
import functools

import jax
import jax.numpy as jnp
from jax.experimental import pallas as pl
from jax.experimental.pallas import tpu as pltpu


def _tpu_info():
    """(vmem_capacity_bytes, tensorcores_per_chip) with safe fallbacks."""
    vmem_cap = 128 << 20
    n_cores = 1
    try:
        info = pltpu.get_tpu_info()
        vmem_cap = int(getattr(info, "vmem_capacity_bytes", vmem_cap))
    except Exception:
        pass
    try:
        kind = jax.devices()[0].device_kind.lower()
        if "v7" in kind:
            n_cores = 2
    except Exception:
        pass
    return vmem_cap, n_cores


def _kld_kernel(pred_ref, tgt_ref, out_ref, acc_ref, *, n_rows, tile_b, tiles_per_split):
    c = pl.program_id(0)  # split (core) axis, "parallel"
    j = pl.program_id(1)  # row-tile axis, "arbitrary" (carries the accumulator)

    @pl.when(j == 0)
    def _():
        acc_ref[...] = jnp.zeros_like(acc_ref)

    # Compute in f32 regardless of input dtype (bf16 inputs halve HBM traffic,
    # f32 keeps the softmax / log math stable; required on v5e where VPU/EUP lack bf16).
    pred = pred_ref[...].astype(jnp.float32)
    tgt = tgt_ref[...].astype(jnp.float32)

    # log-softmax pieces of pred (row-wise; D is the lane axis).
    p_shift = pred - jnp.max(pred, axis=-1, keepdims=True)
    p_logsum = jnp.log(jnp.sum(jnp.exp(p_shift), axis=-1, keepdims=True))

    # softmax pieces of target.
    t_shift = tgt - jnp.max(tgt, axis=-1, keepdims=True)
    t_exp = jnp.exp(t_shift)
    t_sum = jnp.sum(t_exp, axis=-1, keepdims=True)
    # One reciprocal per row; approx=False keeps full f32 fidelity vs. the reference.
    inv_t_sum = pl.reciprocal(t_sum)
    log_t_sum = jnp.log(t_sum)

    # kl = softmax(t) * (log_softmax(t) - log_softmax(p))
    #    = (t_exp / t_sum) * ((t_shift - p_shift) + (p_logsum - log_t_sum))
    kl = (t_exp * inv_t_sum) * ((t_shift - p_shift) + (p_logsum - log_t_sum))

    # Mask rows past the true batch size (partial tail block / out-of-range split tiles).
    # Cheap: (tb, 1) row-index column, broadcast across lanes by the select.
    row0 = (c * tiles_per_split + j) * tile_b
    row_ids = row0 + jax.lax.broadcasted_iota(jnp.int32, (kl.shape[0], 1), 0)
    kl = jnp.where(row_ids < n_rows, kl, 0.0)

    # Sublane-collapse only; keep lane partials resident across the tile loop.
    acc_ref[...] += jnp.sum(kl, axis=0, keepdims=True)

    # Epilogue: single lane->scalar reduce + scalar store, once per split.
    @pl.when(j == pl.num_programs(1) - 1)
    def _():
        out_ref[0, 0] = jnp.sum(acc_ref[...])


def kld_loss_pallas(pred: jax.Array, target: jax.Array, loss_weight: float = 1.0,
                    reduction: str = "mean", max_tile_rows: int | None = None) -> jax.Array:
    """KL divergence loss matching KLDLoss_Pytorch.forward (reduction in mean/batchmean/sum)."""
    assert pred.shape == target.shape, "pred/target shape mismatch"
    if reduction == "none":
        # TODO(synk): elementwise ('none') output not implemented in this reduction kernel.
        raise NotImplementedError("reduction='none' is not supported by this kernel")

    orig_batch = pred.shape[0]
    orig_elems = 1
    for s in pred.shape:
        orig_elems *= s

    # Softmax is over the last axis; leading axes are just more rows.
    D = pred.shape[-1]
    pred2 = pred.reshape(-1, D)
    target2 = target.reshape(-1, D)
    B = pred2.shape[0]

    vmem_cap, n_cores = _tpu_info()
    itemsize = max(jnp.dtype(pred2.dtype).itemsize, jnp.dtype(target2.dtype).itemsize)

    # ---- VMEM-budget-driven, generation-aware tile sizing (rows axis only; D never split) ----
    # Per-row working set: 2 inputs x 2 pipeline buffers + ~8 f32 temporaries (conservative).
    bytes_per_row = 2 * 2 * D * itemsize + 8 * D * 4
    headroom = 8 << 20
    vmem_cap_small = vmem_cap <= (64 << 20)                 # v7x generation: 64 MiB / TC
    vmem_limit_cap = (48 << 20) if vmem_cap_small else (96 << 20)
    vmem_budget = vmem_limit_cap - headroom

    tb_max = vmem_budget // bytes_per_row
    tb_max = min(tb_max, (4 << 20) // max(D * itemsize, 1))  # <= ~4 MiB per input block
    tb_max = min(tb_max, 8192)
    if max_tile_rows is not None:
        tb_max = min(tb_max, int(max_tile_rows))
    tb_max = max(8, (tb_max // 8) * 8)

    if B <= tb_max:
        tb = B          # single full-extent block on the row axis (allowed even if B % 8 != 0)
    else:
        tb = tb_max     # multiple of 8; last block may be partial (masked in-kernel)

    tiles_total = pl.cdiv(B, tb)
    num_splits = 2 if (n_cores >= 2 and tiles_total >= 2) else 1
    tiles_per_split = pl.cdiv(tiles_total, num_splits)

    # VMEM limit: estimated need + headroom, no artificial floor, generation-aware cap.
    need = tb * bytes_per_row + headroom
    vmem_limit = int(min(need, vmem_limit_cap))

    kernel = functools.partial(
        _kld_kernel, n_rows=B, tile_b=tb, tiles_per_split=tiles_per_split)

    last_tile = tiles_total - 1

    def row_block(c, j):
        # Clamp so fully out-of-range tiles (only possible for the second split when
        # tiles_total is odd) still read a valid block; the in-kernel row mask zeroes them.
        return (jnp.minimum(c * tiles_per_split + j, last_tile), 0)

    partials = pl.pallas_call(
        kernel,
        out_shape=jax.ShapeDtypeStruct((num_splits, 1), jnp.float32),
        grid_spec=pltpu.PrefetchScalarGridSpec(
            num_scalar_prefetch=0,
            grid=(num_splits, tiles_per_split),
            in_specs=[
                pl.BlockSpec((tb, D), row_block),
                pl.BlockSpec((tb, D), row_block),
            ],
            out_specs=pl.BlockSpec((1, 1), lambda c, j: (c, 0),
                                   memory_space=pltpu.MemorySpace.SMEM),
            scratch_shapes=[pltpu.VMEM((1, D), jnp.float32)],
        ),
        compiler_params=pltpu.CompilerParams(
            dimension_semantics=("parallel", "arbitrary"),
            vmem_limit_bytes=vmem_limit,
        ),
    )(pred2, target2)

    total = jnp.sum(partials)
    if reduction == "mean":
        divisor = orig_elems
    elif reduction == "batchmean":
        divisor = orig_batch
    elif reduction == "sum":
        divisor = 1
    else:
        raise ValueError(f"unsupported reduction: {reduction}")
    return total * (loss_weight / divisor)


def _kld_loss_ref(pred, target, loss_weight=1.0):
    log_p = jax.nn.log_softmax(pred.astype(jnp.float32), axis=-1)
    t = jax.nn.softmax(target.astype(jnp.float32), axis=-1)
    kl = t * (jnp.log(t) - log_p)
    return jnp.mean(kl) * loss_weight


if __name__ == "__main__":
    key = jax.random.PRNGKey(0)
    k1, k2, k3, k4, k5, k6, k7, k8 = jax.random.split(key, 8)

    # Case 1: small CLIP-like logits, batch=8, classes=128.
    B, D = 8, 128
    pred = jax.random.normal(k1, (B, D), dtype=jnp.float32)
    target = jax.random.normal(k2, (B, D), dtype=jnp.float32)
    loss = kld_loss_pallas(pred, target, loss_weight=1.0)
    jax.block_until_ready(loss)
    ref = _kld_loss_ref(pred, target, loss_weight=1.0)
    assert jnp.allclose(loss, ref, atol=1e-6, rtol=1e-5), (loss, ref)

    # Case 2: ragged batch (no wrapper padding; full-extent non-aligned row block), weight != 1.
    B2, D2 = 13, 128
    pred2 = jax.random.normal(k3, (B2, D2), dtype=jnp.float32)
    target2 = jax.random.normal(k4, (B2, D2), dtype=jnp.float32)
    loss2 = kld_loss_pallas(pred2, target2, loss_weight=0.5)
    jax.block_until_ready(loss2)
    ref2 = _kld_loss_ref(pred2, target2, loss_weight=0.5)
    assert jnp.allclose(loss2, ref2, atol=1e-6, rtol=1e-5), (loss2, ref2)

    # Case 3: multi-tile accumulation with a partial last block (forced small tile).
    B3, D3 = 200, 128
    pred3 = jax.random.normal(k5, (B3, D3), dtype=jnp.float32)
    target3 = jax.random.normal(k6, (B3, D3), dtype=jnp.float32)
    loss3 = kld_loss_pallas(pred3, target3, loss_weight=1.0, max_tile_rows=64)
    jax.block_until_ready(loss3)
    ref3 = _kld_loss_ref(pred3, target3, loss_weight=1.0)
    assert jnp.allclose(loss3, ref3, atol=1e-6, rtol=1e-5), (loss3, ref3)

    # Case 4: 3-D logits (leading dims flattened in the wrapper), bf16 inputs (halved HBM read).
    pred4 = jax.random.normal(k7, (2, 5, 128), dtype=jnp.bfloat16)
    target4 = jax.random.normal(k8, (2, 5, 128), dtype=jnp.bfloat16)
    loss4 = kld_loss_pallas(pred4, target4, loss_weight=2.0)
    jax.block_until_ready(loss4)
    ref4 = _kld_loss_ref(pred4, target4, loss_weight=2.0)
    assert jnp.allclose(loss4, ref4, atol=1e-3, rtol=1e-2), (loss4, ref4)

    print("KERNEL_OK")
</pallas_src>

<mosaic_0001>
module attributes {stable_mosaic.version = 11 : i64} {
  func.func @_kld_kernel(%arg0: i32, %arg1: i32, %arg2: memref<8x128xf32, #tpu.memory_space<vmem>>, %arg3: memref<8x128xf32, #tpu.memory_space<vmem>>, %arg4: memref<1x1xf32, #tpu.memory_space<smem>>, %arg5: memref<1x128xf32, #tpu.memory_space<vmem>>) attributes {dimension_semantics = [#tpu.dimension_semantics<parallel>, #tpu.dimension_semantics<arbitrary>], iteration_bounds = array<i64: 1, 1>, scalar_prefetch = 0 : i64, scratch_operands = 1 : i64, tpu.core_type = #tpu.core_type<tc>, window_params = [{transform_indices = @transform_0, window_bounds = array<i64: 8, 128>}, {transform_indices = @transform_1, window_bounds = array<i64: 8, 128>}, {transform_indices = @transform_2, window_bounds = array<i64: 1, 1>}]} {
    %c0_i32 = arith.constant 0 : i32
    %0 = arith.cmpi eq, %arg1, %c0_i32 : i32
    %1 = arith.extui %0 : i1 to i32
    %c0_i32_0 = arith.constant 0 : i32
    %2 = arith.cmpi ne, %1, %c0_i32_0 : i32
    scf.if %2 {
      %cst_16 = arith.constant 0.000000e+00 : f32
      %49 = vector.broadcast %cst_16 : f32 to vector<1x128xf32>
      %c0_17 = arith.constant 0 : index
      %c0_18 = arith.constant 0 : index
      %50 = vector.load %arg5[%c0_17, %c0_18] : memref<1x128xf32, #tpu.memory_space<vmem>>, vector<1x128xf32>
      tpu.vector_store %arg5[%c0_17, %c0_18], %49 {strides = array<i32>} : memref<1x128xf32, #tpu.memory_space<vmem>>, vector<1x128xf32>,
    } else {
    }
    %c0 = arith.constant 0 : index
    %c0_1 = arith.constant 0 : index
    %3 = vector.load %arg2[%c0, %c0_1] : memref<8x128xf32, #tpu.memory_space<vmem>>, vector<8x128xf32>
    %c0_2 = arith.constant 0 : index
    %c0_3 = arith.constant 0 : index
    %4 = vector.load %arg3[%c0_2, %c0_3] : memref<8x128xf32, #tpu.memory_space<vmem>>, vector<8x128xf32>
    %cst = arith.constant dense<0xFF800000> : vector<8xf32>
    %5 = vector.multi_reduction <maximumf>, %3, %cst [1] : vector<8x128xf32> to vector<8xf32>
    %6 = vector.shape_cast %5 : vector<8xf32> to vector<8x1xf32>
    %7 = vector.broadcast %6 : vector<8x1xf32> to vector<8x128xf32>
    %8 = arith.subf %3, %7 : vector<8x128xf32>
    %9 = math.exp %8 : vector<8x128xf32>
    %cst_4 = arith.constant dense<0.000000e+00> : vector<8xf32>
    %10 = vector.multi_reduction <add>, %9, %cst_4 [1] : vector<8x128xf32> to vector<8xf32>
    %11 = vector.shape_cast %10 : vector<8xf32> to vector<8x1xf32>
    %12 = math.log %11 : vector<8x1xf32>
    %cst_5 = arith.constant dense<0xFF800000> : vector<8xf32>
    %13 = vector.multi_reduction <maximumf>, %4, %cst_5 [1] : vector<8x128xf32> to vector<8xf32>
    %14 = vector.shape_cast %13 : vector<8xf32> to vector<8x1xf32>
    %15 = vector.broadcast %14 : vector<8x1xf32> to vector<8x128xf32>
    %16 = arith.subf %4, %15 : vector<8x128xf32>
    %17 = math.exp %16 : vector<8x128xf32>
    %cst_6 = arith.constant dense<0.000000e+00> : vector<8xf32>
    %18 = vector.multi_reduction <add>, %17, %cst_6 [1] : vector<8x128xf32> to vector<8xf32>
    %19 = vector.shape_cast %18 : vector<8xf32> to vector<8x1xf32>
    %20 = tpu.reciprocal %19 : vector<8x1xf32> -> vector<8x1xf32>
    %21 = math.log %19 : vector<8x1xf32>
    %22 = vector.broadcast %20 : vector<8x1xf32> to vector<8x128xf32>
    %23 = arith.mulf %17, %22 : vector<8x128xf32>
    %24 = arith.subf %16, %8 : vector<8x128xf32>
    %25 = arith.subf %12, %21 : vector<8x1xf32>
    %26 = vector.broadcast %25 : vector<8x1xf32> to vector<8x128xf32>
    %27 = arith.addf %24, %26 : vector<8x128xf32>
    %28 = arith.mulf %23, %27 : vector<8x128xf32>
    %c1_i32 = arith.constant 1 : i32
    %29 = arith.muli %arg0, %c1_i32 : i32
    %30 = arith.addi %29, %arg1 : i32
    %c8_i32 = arith.constant 8 : i32
    %31 = arith.muli %30, %c8_i32 : i32
    %32 = tpu.iota {dimensions = array<i32: 0>} : vector<8x1xi32>
    %33 = vector.broadcast %31 : i32 to vector<8x1xi32>
    %34 = arith.addi %33, %32 : vector<8x1xi32>
    %c8_i32_7 = arith.constant 8 : i32
    %35 = vector.broadcast %c8_i32_7 : i32 to vector<8x1xi32>
    %36 = arith.cmpi slt, %34, %35 : vector<8x1xi32>
    %cst_8 = arith.constant 0.000000e+00 : f32
    %37 = vector.shape_cast %36 : vector<8x1xi1> to vector<8x1xi1>
    %38 = vector.broadcast %37 : vector<8x1xi1> to vector<8x128xi1>
    %39 = vector.broadcast %cst_8 : f32 to vector<8x128xf32>
    %40 = arith.select %38, %28, %39 : vector<8x128xi1>, vector<8x128xf32>
    %c0_9 = arith.constant 0 : index
    %c0_10 = arith.constant 0 : index
    %41 = vector.load %arg5[%c0_9, %c0_10] : memref<1x128xf32, #tpu.memory_space<vmem>>, vector<1x128xf32>
    %cst_11 = arith.constant dense<0.000000e+00> : vector<128xf32>
    %42 = vector.multi_reduction <add>, %40, %cst_11 [0] : vector<8x128xf32> to vector<128xf32>
    %43 = vector.shape_cast %42 : vector<128xf32> to vector<1x128xf32>
    %44 = arith.addf %41, %43 : vector<1x128xf32>
    %c0_12 = arith.constant 0 : index
    %c0_13 = arith.constant 0 : index
    %45 = vector.load %arg5[%c0_12, %c0_13] : memref<1x128xf32, #tpu.memory_space<vmem>>, vector<1x128xf32>
    tpu.vector_store %arg5[%c0_12, %c0_13], %44 {strides = array<i32>} : memref<1x128xf32, #tpu.memory_space<vmem>>, vector<1x128xf32>,
    %c0_i32_14 = arith.constant 0 : i32
    %46 = arith.cmpi eq, %arg1, %c0_i32_14 : i32
    %47 = arith.extui %46 : i1 to i32
    %c0_i32_15 = arith.constant 0 : i32
    %48 = arith.cmpi ne, %47, %c0_i32_15 : i32
    scf.if %48 {
      %c0_16 = arith.constant 0 : index
      %c0_17 = arith.constant 0 : index
      %49 = vector.load %arg5[%c0_16, %c0_17] : memref<1x128xf32, #tpu.memory_space<vmem>>, vector<1x128xf32>
      %50 = vector.shape_cast %49 : vector<1x128xf32> to vector<1x1x128xf32>
      %cst_18 = arith.constant dense<0.000000e+00> : vector<1xf32>
      %51 = vector.multi_reduction <add>, %50, %cst_18 [1, 2] : vector<1x1x128xf32> to vector<1xf32>
      %52 = vector.shape_cast %51 : vector<1xf32> to vector<1x1x1xf32>
      %53 = vector.extract %52[0, 0, 0] : f32 from vector<1x1x1xf32>
      %c0_19 = arith.constant 0 : index
      %c0_20 = arith.constant 0 : index
      %54 = memref.load %arg4[%c0_19, %c0_20] : memref<1x1xf32, #tpu.memory_space<smem>>
      memref.store %53, %arg4[%c0_19, %c0_20] : memref<1x1xf32, #tpu.memory_space<smem>>
    } else {
    }
    return
  }
  func.func @transform_0(%arg0: i32, %arg1: i32) -> (i32, i32) {
    %c1_i32 = arith.constant 1 : i32
    %0 = arith.muli %arg0, %c1_i32 : i32
    %1 = arith.addi %0, %arg1 : i32
    %c0_i32 = arith.constant 0 : i32
    %2 = arith.minsi %1, %c0_i32 : i32
    %c0_i32_0 = arith.constant 0 : i32
    %c0_i32_1 = arith.constant 0 : i32
    return %2, %c0_i32_0 : i32, i32
  }
  func.func @transform_1(%arg0: i32, %arg1: i32) -> (i32, i32) {
    %c1_i32 = arith.constant 1 : i32
    %0 = arith.muli %arg0, %c1_i32 : i32
    %1 = arith.addi %0, %arg1 : i32
    %c0_i32 = arith.constant 0 : i32
    %2 = arith.minsi %1, %c0_i32 : i32
    %c0_i32_0 = arith.constant 0 : i32
    %c0_i32_1 = arith.constant 0 : i32
    return %2, %c0_i32_0 : i32, i32
  }
  func.func @transform_2(%arg0: i32, %arg1: i32) -> (i32, i32) {
    %c0_i32 = arith.constant 0 : i32
    %c0_i32_0 = arith.constant 0 : i32
    return %arg0, %c0_i32 : i32, i32
  }
}

</mosaic_0001>

<bundles_post_ra>
// kernel: tpu_custom_call.1
= control target key start
LH: loop header
LB: loop body
LE: loop exit
PB: predicated region body
PF: predicated region fallthrough
CT: control target
= control target key end

     0   :  { %7 = vsyncpa [#allocation4], 0  ;;  %s269_s0 = inlined_call_operand.hbm [shape: f32[8,128], index: 0, kind: input, shape index: {}]   ;;  %s270_s1 = inlined_call_operand.hbm [shape: f32[8,128], index: 1, kind: input, shape index: {}]   ;;  %s271_s2 = inlined_call_operand.hbm [shape: f32[1,1], index: 2, kind: output, shape index: {}]  }
   0x1   :  { %8 = vsyncpa [#allocation7], 0 }
   0x2   :  { %9 = vsyncpa [#allocation5], 0  ;;  %s214_s9 = smov [#allocation3]   ;;  %s215_s11 = smov [#allocation6]  }
   0x3   :  { %s21_s10 = sshll.u32 %s214_s9, 4  ;;  %s36_s12 = sshll.u32 %s215_s11, 4  ;;  %s22_s10 = int_to_ptr.vmem [resolvable:$true] %s21_s10  ;;  %s37_s12 = int_to_ptr.vmem [resolvable:$true] %s36_s12 }
   0x4   :  { %s154_s15 = scalar_lea.hbm %s269_s0, 128 }
   0x5   :  { %p155_p0 = scmp.ne.s32.totalorder %s269_s0, %s154_s15  ;;  %p158_p1 = scmp.lt.u32.totalorder %s154_s15, %s269_s0 }
   0x7   :  { %p160_p2 = pnand %p158_p1, %p155_p0 }
   0x9   :  { %163 = shalt.err (!%p160_p2)
}
   0xa   :  { %s164_s20 = scalar_lea.vmem %s22_s10, 128  ;;  %p169_p4 = scmp.lt.s32.totalorder %s22_s10, %s22_s10 }
   0xb   :  { %p165_p3 = scmp.ne.s32.totalorder %s22_s10, %s164_s20  ;;  %p170_p5 = scmp.lt.s32.totalorder %s164_s20, %s164_s20 }
   0xd   :  { %p171_p6 = por %p170_p5, %p169_p4 }
   0xf   :  { %p172_p7 = pnand %p171_p6, %p165_p3 }
  0x11   :  { %175 = shalt.err (!%p172_p7)
}
  0x12   :  { %24 = dma.hbm_to_vmem [thread:$0]  %s269_s0, 128, %s22_s10, [#allocation4]  }
  0x13   :  { %s176_s25 = scalar_lea.hbm %s270_s1, 128 }
  0x14   :  { %p177_p8 = scmp.ne.s32.totalorder %s270_s1, %s176_s25  ;;  %p180_p9 = scmp.lt.u32.totalorder %s176_s25, %s270_s1 }
  0x16   :  { %p182_p10 = pnand %p180_p9, %p177_p8 }
  0x18   :  { %185 = shalt.err (!%p182_p10)
}
  0x19   :  { %s186_s30 = scalar_lea.vmem %s37_s12, 128  ;;  %p191_p12 = scmp.lt.s32.totalorder %s37_s12, %s37_s12 }
  0x1a   :  { %p187_p11 = scmp.ne.s32.totalorder %s37_s12, %s186_s30  ;;  %p192_p13 = scmp.lt.s32.totalorder %s186_s30, %s186_s30 }
  0x1c   :  { %p193_p0 = por %p192_p13, %p191_p12 }
  0x1e   :  { %p194_p1 = pnand %p193_p0, %p187_p11 }
  0x20   :  { %197 = shalt.err (!%p194_p1)
}
  0x21   :  { %39 = dma.hbm_to_vmem [thread:$0]  %s270_s1, 128, %s37_s12, [#allocation7]  }
  0x22   :  { %208 = dma.done.wait [#allocation4], 128  }
  0x23   :  { %209 = vsyncadd [#allocation4], 4294967168 }
  0x24   :  { %210 = dma.done.wait [#allocation7], 128  }
  0x25   :  { %211 = vsyncadd [#allocation7], 4294967168  ;;  %v216_v0 = vmov 0.0   ;;  %v57_v1 = vld [vmem:[#allocation3] sm:$0xff]  ;;  %v58_v2 = vld [vmem:[#allocation6] sm:$0xff]  ;;  %vm106_vm0 = vcmask 1040384  }
  0x26   :  { %56 = vst [vmem:[#allocation2] sm:$0x1] %v216_v0  ;;  %59 = vmax.xlane.f32.xlu0 %v57_v1  ;;  %s198_s6 = scalar_lea.hbm %s271_s2, 16 }
  0x27   :  { %p199_p2 = scmp.ne.s32.totalorder %s271_s2, %s198_s6  ;;  %p202_p3 = scmp.lt.u32.totalorder %s198_s6, %s271_s2 }
  0x29   :  { %p204_p4 = pnand %p202_p3, %p199_p2 }
  0x2a   :  { %68 = vmax.xlane.f32.xlu0 %v58_v2 }
  0x2d   :  { %v93_v28 = vld [vmem:[#allocation2] sm:$0x1] }
  0xb3   :  { %v60_v3 = vpop.xlane.xlu0 %59 }
  0xb4   :  { %v61_v4 = vsub.f32 %v57_v1, %v60_v3 }
  0xb6   :  { %v62_v5 = vmul.f32 1.442695, %v61_v4 }
  0xb7   :  { %v69_v6 = vpop.xlane.xlu0 %68 }
  0xb8   :  { %v70_v7 = vsub.f32 %v58_v2, %v69_v6  ;;  %144 = vpow2.f32 %v62_v5 }
  0xba   :  { %v71_v8 = vmul.f32 1.442695, %v70_v7  ;;  %v79_v9 = vsub.f32 %v70_v7, %v61_v4 }
  0xbc   :  { %146 = vpow2.f32 %v71_v8 }
  0xc2   :  { %v145_v10 = vpop.eup %144 }
  0xc3   :  { %64 = vadd.xlane.f32.xlu1 %v145_v10 }
  0xc6   :  { %v147_v11 = vpop.eup %146 }
  0xc7   :  { %73 = vadd.xlane.f32.xlu1 %v147_v11 }
 0x150   :  { %v65_v12 = vpop.xlane.xlu1 %64 }
 0x151   :  { %148 = vlog2.f32 %v65_v12 }
 0x154   :  { %v74_v13 = vpop.xlane.xlu1 %73 }
 0x155   :  { %150 = vlog2.f32 %v74_v13 }
 0x156   :  { %152 = vrcp.f32 %v74_v13 }
 0x15b   :  { %v149_v14 = vpop.eup %148 }
 0x15c   :  { %v67_v16 = vmul.f32 0.6931472, %v149_v14 }
 0x15f   :  { %v151_v15 = vpop.eup %150 }
 0x160   :  { %v77_v17 = vmul.f32 0.6931472, %v151_v15  ;;  %v153_v18 = vpop.eup %152 }
 0x161   :  { %v78_v20 = vmul.f32 %v153_v18, %v147_v11 }
 0x162   :  { %v80_v19 = vsub.f32 %v67_v16, %v77_v17 }
 0x164   :  { %v81_v21 = vadd.f32 %v80_v19, %v79_v9 }
 0x166   :  { %v82_v22 = vmul.f32 %v81_v21, %v78_v20 }
 0x168   :  { %v94_v23 = vrot.slane %v82_v22, 4 }
 0x16a   :  { %v95_v24 = vadd.f32 %v94_v23, %v82_v22 }
 0x16c   :  { %v96_v25 = vrot.slane %v95_v24, 2 }
 0x16e   :  { %v97_v26 = vadd.f32 %v96_v25, %v95_v24 }
 0x170   :  { %v98_v27 = vrot.slane %v97_v26, 1 }
 0x172   :  { %v99_v29 = vadd.f32 %v98_v27, %v97_v26 }
 0x174   :  { %v100_v30 = vadd.f32 %v99_v29, %v93_v28 }
 0x176   :  { %101 = vst [vmem:[#allocation2] sm:$0x1] %v100_v30 }
 0x17d   :  { %v105_v31 = vld [vmem:[#allocation2] sm:$0x1] }
 0x17e   :  { %v107_v32 = vsel %vm106_vm0, %v105_v31, 0.0 }
 0x17f   :  { %108 = vadd.xlane.f32.xlu0 %v107_v32 }
 0x20c   :  { %v109_v33 = vpop.xlane.xlu0 %108 }
 0x20d   :  { %v110_v34 = vrot.slane %v109_v33, 4 }
 0x20f   :  { %v111_v35 = vadd.f32 %v110_v34, %v109_v33 }
 0x211   :  { %v112_v36 = vrot.slane %v111_v35, 2 }
 0x213   :  { %v113_v37 = vadd.f32 %v112_v36, %v111_v35 }
 0x215   :  { %v114_v38 = vrot.slane %v113_v37, 1 }
 0x217   :  { %v115_v39 = vadd.f32 %v114_v38, %v113_v37 }
 0x219   :  { %138 = vpush %v115_v39 }
 0x24a   :  { %s139_s1 = spop %138 }
 0x24b   :  { %118 = sst [smem:[#allocation8]] %s139_s1 }
 0x24c   :  { %207 = shalt.err (!%p204_p4)
}
 0x24d   :  { %s217_s11 = smov [#allocation8]  }
 0x24e   :  { %126 = dma.smem_to_hbm %s217_s11, 16, %s271_s2, [#allocation5]  }
 0x24f   :  { %212 = dma.done.wait [#allocation5], 16  }
 0x250   :  { %213 = vsyncadd [#allocation5], 4294967280 }
 0x251   :  { %130 = sfence }
 0x252   :  { %131 = vsyncpa [#allocation4], 1 }
 0x253   :  { %132 = vsyncpa [#allocation7], 1 }
 0x254   :  { %133 = vsyncpa [#allocation5], 1 }

</bundles_post_ra>
